<compile_context>
chip_gen: v7x
topology: tpu7x:2x2x1
jax: 0.10.0
libtpu: 0.0.40
codegen_flags: <defaults>
</compile_context>

<pallas_src>
import jax
import jax.numpy as jnp
from jax.experimental import pallas as pl
from jax.experimental.pallas import tpu as pltpu

# ---- model hyper-parameters (from the PyTorch script) ----
HIDDEN_SIZE = 2
INPUT_SIZE = 1
NUM_CLASSES = 1
NUM_LAYERS = 1
SEQ_LENGTH = 3

LANE = 128  # TPU lane width


def lstm_kernel(x_ref, w_ih_ref, w_hh_ref, b_ref, w_fc_ref, b_fc_ref, out_ref):
    """LSTM recurrence + final FC for one 128-wide batch block, all on the VPU/EUP.

    x_ref    : (T, I, Bb)  time-major input, batch on lanes
    w_ih_ref : (4H, I)     input->gates weight, PyTorch layout, gate order i,f,g,o
    w_hh_ref : (4H, H)     hidden->gates weight, PyTorch layout
    b_ref    : (4H, 1)     b_ih + b_hh (pre-summed)
    w_fc_ref : (C, H)      final linear weight, PyTorch layout
    b_fc_ref : (C, 1)      final linear bias
    out_ref  : (C, Bb)     FC(final hidden state), batch on lanes
    """
    T, I, Bb = x_ref.shape
    H4, H = w_hh_ref.shape
    C = out_ref.shape[0]

    w_ih = w_ih_ref[...]          # (4H, I)
    w_hh = w_hh_ref[...]          # (4H, H)
    w_fc = w_fc_ref[...]          # (C, H)
    x = x_ref[...]                # (T, I, Bb)

    # Hoist all weight/bias lane-broadcasts out of the unrolled time loop.
    b_b = jnp.broadcast_to(b_ref[...], (H4, Bb))
    w_hh_cols = [jnp.broadcast_to(w_hh[:, j:j + 1], (H4, Bb)) for j in range(H)]
    w_fc_cols = [jnp.broadcast_to(w_fc[:, j:j + 1], (C, Bb)) for j in range(H)]
    b_fc_b = jnp.broadcast_to(b_fc_ref[...], (C, Bb))

    # Input projection for ALL timesteps up front (off the serial critical path):
    #   pre[t] = (b_ih + b_hh) + sum_i W_ih[:, i] * x[t, i, :]   -> (T, 4H, Bb)
    pre = jnp.broadcast_to(b_b[None, :, :], (T, H4, Bb))
    for i in range(I):
        pre = pre + w_ih[None, :, i:i + 1] * x[:, i:i + 1, :]

    h = jnp.zeros((H, Bb), jnp.float32)
    c = jnp.zeros((H, Bb), jnp.float32)

    # SEQ_LENGTH is tiny and static -> unrolled Python loop (full LLO visibility).
    for t in range(T):
        # Only the hidden-state dependent part stays inside the recurrence.
        gates = pre[t]                                   # (4H, Bb)
        for j in range(H):
            gates = gates + w_hh_cols[j] * h[j:j + 1, :]

        # One sigmoid sweep over the whole gate tile (i,f,g,o share one vreg at Bb=128),
        # then a single tanh for the g slice and one for the new cell state.
        sg = jax.nn.sigmoid(gates)
        i_g = sg[0 * H:1 * H, :]
        f_g = sg[1 * H:2 * H, :]
        o_g = sg[3 * H:4 * H, :]
        g_g = jnp.tanh(gates[2 * H:3 * H, :])

        c = f_g * c + i_g * g_g
        h = o_g * jnp.tanh(c)

    # Final FC on the last hidden state, again as broadcast multiply-adds.
    out = b_fc_b
    for j in range(H):
        out = out + w_fc_cols[j] * h[j:j + 1, :]
    out_ref[...] = out.astype(out_ref.dtype)


def lstm_forward(x, params):
    """x: (B, T, I) float32, batch_first like PyTorch. Returns (B, num_classes)."""
    w_ih, w_hh, b_ih, b_hh, w_fc, b_fc = params
    B, T, I = x.shape
    H = w_hh.shape[1]
    C = w_fc.shape[0]

    # Pad batch to a multiple of the lane width so every vreg / store is lane-dense.
    Bp = pl.cdiv(B, LANE) * LANE

    # Layout glue (tiny at these sizes): time-major with batch on lanes.
    x_tm = jnp.transpose(x, (1, 2, 0)).astype(jnp.float32)        # (T, I, B)
    if Bp != B:
        x_tm = jnp.pad(x_tm, ((0, 0), (0, 0), (0, Bp - B)))       # (T, I, Bp)

    w_ih_f = w_ih.astype(jnp.float32)                             # (4H, I)
    w_hh_f = w_hh.astype(jnp.float32)                             # (4H, H)
    b_sum = (b_ih + b_hh).reshape(4 * H, 1).astype(jnp.float32)   # (4H, 1)
    w_fc_f = w_fc.astype(jnp.float32)                             # (C, H)
    b_fc_r = b_fc.reshape(C, 1).astype(jnp.float32)               # (C, 1)

    out_cb = pl.pallas_call(
        lstm_kernel,
        out_shape=jax.ShapeDtypeStruct((C, Bp), jnp.float32),
        grid_spec=pltpu.PrefetchScalarGridSpec(
            num_scalar_prefetch=0,
            grid=(Bp // LANE,),
            in_specs=[
                pl.BlockSpec((T, I, LANE), lambda b: (0, 0, b)),   # x: blocked on batch lanes
                pl.BlockSpec((4 * H, I), lambda b: (0, 0)),        # tiny weights replicated
                pl.BlockSpec((4 * H, H), lambda b: (0, 0)),
                pl.BlockSpec((4 * H, 1), lambda b: (0, 0)),
                pl.BlockSpec((C, H), lambda b: (0, 0)),
                pl.BlockSpec((C, 1), lambda b: (0, 0)),
            ],
            out_specs=pl.BlockSpec((C, LANE), lambda b: (0, b)),   # lane-dense output store
        ),
        compiler_params=pltpu.CompilerParams(
            dimension_semantics=("parallel",),  # v7x: shard batch blocks over both TCs
        ),
    )(x_tm, w_ih_f, w_hh_f, b_sum, w_fc_f, b_fc_r)

    # Back to PyTorch (batch, num_classes) layout; drop the pad lanes.
    return out_cb[:, :B].T


def lstm_reference(x, params):
    """Pure-JAX reference matching torch.nn.LSTM + Linear semantics."""
    w_ih, w_hh, b_ih, b_hh, w_fc, b_fc = params
    B, T, _ = x.shape
    H = w_hh.shape[1]
    h = jnp.zeros((B, H), jnp.float32)
    c = jnp.zeros((B, H), jnp.float32)
    for t in range(T):
        gates = x[:, t, :] @ w_ih.T + h @ w_hh.T + b_ih + b_hh
        i_g = jax.nn.sigmoid(gates[:, 0 * H:1 * H])
        f_g = jax.nn.sigmoid(gates[:, 1 * H:2 * H])
        g_g = jnp.tanh(gates[:, 2 * H:3 * H])
        o_g = jax.nn.sigmoid(gates[:, 3 * H:4 * H])
        c = f_g * c + i_g * g_g
        h = o_g * jnp.tanh(c)
    return h @ w_fc.T + b_fc


def init_params(key, input_size, hidden_size, num_classes):
    # deterministic uniform(-1/sqrt(H), 1/sqrt(H)) init, mirroring PyTorch's default.
    ks = jax.random.split(key, 6)
    bound = 1.0 / jnp.sqrt(hidden_size)
    u = lambda k, shape: jax.random.uniform(k, shape, jnp.float32, -bound, bound)
    w_ih = u(ks[0], (4 * hidden_size, input_size))   # gate order i,f,g,o (PyTorch)
    w_hh = u(ks[1], (4 * hidden_size, hidden_size))
    b_ih = u(ks[2], (4 * hidden_size,))
    b_hh = u(ks[3], (4 * hidden_size,))
    w_fc = u(ks[4], (num_classes, hidden_size))
    b_fc = u(ks[5], (num_classes,))
    return (w_ih, w_hh, b_ih, b_hh, w_fc, b_fc)


if __name__ == "__main__":
    key = jax.random.PRNGKey(0)
    k_x, k_p = jax.random.split(key)

    batch = 128  # one full lane-dense batch block
    x = jax.random.normal(k_x, (batch, SEQ_LENGTH, INPUT_SIZE), jnp.float32)
    params = init_params(k_p, INPUT_SIZE, HIDDEN_SIZE, NUM_CLASSES)

    out = jax.block_until_ready(lstm_forward(x, params))
    ref = lstm_reference(x, params)

    assert out.shape == (batch, NUM_CLASSES), out.shape
    assert jnp.allclose(out, ref, atol=1e-5, rtol=1e-5), (out, ref)
    print("KERNEL_OK")
</pallas_src>

<mosaic_0001>
module attributes {stable_mosaic.version = 11 : i64} {
  func.func @lstm_kernel(%arg0: i32, %arg1: memref<3x1x128xf32, #tpu.memory_space<vmem>>, %arg2: memref<8x1xf32, #tpu.memory_space<vmem>>, %arg3: memref<8x2xf32, #tpu.memory_space<vmem>>, %arg4: memref<8x1xf32, #tpu.memory_space<vmem>>, %arg5: memref<1x2xf32, #tpu.memory_space<vmem>>, %arg6: memref<1x1xf32, #tpu.memory_space<vmem>>, %arg7: memref<1x128xf32, #tpu.memory_space<vmem>>) attributes {dimension_semantics = [#tpu.dimension_semantics<parallel>], iteration_bounds = array<i64: 1>, scalar_prefetch = 0 : i64, scratch_operands = 0 : i64, tpu.core_type = #tpu.core_type<tc>, window_params = [{transform_indices = @transform_0, window_bounds = array<i64: 3, 1, 128>}, {pipeline_mode = #tpu.pipeline_mode<synchronous>, transform_indices = @transform_1, window_bounds = array<i64: 8, 1>}, {pipeline_mode = #tpu.pipeline_mode<synchronous>, transform_indices = @transform_2, window_bounds = array<i64: 8, 2>}, {pipeline_mode = #tpu.pipeline_mode<synchronous>, transform_indices = @transform_3, window_bounds = array<i64: 8, 1>}, {pipeline_mode = #tpu.pipeline_mode<synchronous>, transform_indices = @transform_4, window_bounds = array<i64: 1, 2>}, {pipeline_mode = #tpu.pipeline_mode<synchronous>, transform_indices = @transform_5, window_bounds = array<i64: 1, 1>}, {transform_indices = @transform_6, window_bounds = array<i64: 1, 128>}]} {
    %c0 = arith.constant 0 : index
    %c0_0 = arith.constant 0 : index
    %0 = vector.load %arg2[%c0, %c0_0] : memref<8x1xf32, #tpu.memory_space<vmem>>, vector<8x1xf32>
    %c0_1 = arith.constant 0 : index
    %c0_2 = arith.constant 0 : index
    %1 = vector.load %arg3[%c0_1, %c0_2] : memref<8x2xf32, #tpu.memory_space<vmem>>, vector<8x2xf32>
    %c0_3 = arith.constant 0 : index
    %c0_4 = arith.constant 0 : index
    %2 = vector.load %arg5[%c0_3, %c0_4] : memref<1x2xf32, #tpu.memory_space<vmem>>, vector<1x2xf32>
    %c0_5 = arith.constant 0 : index
    %c0_6 = arith.constant 0 : index
    %c0_7 = arith.constant 0 : index
    %3 = vector.load %arg1[%c0_5, %c0_6, %c0_7] : memref<3x1x128xf32, #tpu.memory_space<vmem>>, vector<3x1x128xf32>
    %c0_8 = arith.constant 0 : index
    %c0_9 = arith.constant 0 : index
    %4 = vector.load %arg4[%c0_8, %c0_9] : memref<8x1xf32, #tpu.memory_space<vmem>>, vector<8x1xf32>
    %5 = vector.shape_cast %4 : vector<8x1xf32> to vector<8x1xf32>
    %6 = vector.broadcast %5 : vector<8x1xf32> to vector<8x128xf32>
    %7 = vector.extract_strided_slice %1 {offsets = [0, 0], sizes = [8, 1], strides = [1, 1]} : vector<8x2xf32> to vector<8x1xf32>
    %8 = vector.shape_cast %7 : vector<8x1xf32> to vector<8x1xf32>
    %9 = vector.broadcast %8 : vector<8x1xf32> to vector<8x128xf32>
    %10 = vector.extract_strided_slice %1 {offsets = [0, 1], sizes = [8, 1], strides = [1, 1]} : vector<8x2xf32> to vector<8x1xf32>
    %11 = vector.shape_cast %10 : vector<8x1xf32> to vector<8x1xf32>
    %12 = vector.broadcast %11 : vector<8x1xf32> to vector<8x128xf32>
    %13 = vector.extract_strided_slice %2 {offsets = [0, 0], sizes = [1, 1], strides = [1, 1]} : vector<1x2xf32> to vector<1x1xf32>
    %14 = vector.shape_cast %13 : vector<1x1xf32> to vector<1x1xf32>
    %15 = vector.broadcast %14 : vector<1x1xf32> to vector<1x128xf32>
    %16 = vector.extract_strided_slice %2 {offsets = [0, 1], sizes = [1, 1], strides = [1, 1]} : vector<1x2xf32> to vector<1x1xf32>
    %17 = vector.shape_cast %16 : vector<1x1xf32> to vector<1x1xf32>
    %18 = vector.broadcast %17 : vector<1x1xf32> to vector<1x128xf32>
    %c0_10 = arith.constant 0 : index
    %c0_11 = arith.constant 0 : index
    %19 = vector.load %arg6[%c0_10, %c0_11] : memref<1x1xf32, #tpu.memory_space<vmem>>, vector<1x1xf32>
    %20 = vector.shape_cast %19 : vector<1x1xf32> to vector<1x1xf32>
    %21 = vector.broadcast %20 : vector<1x1xf32> to vector<1x128xf32>
    %22 = vector.shape_cast %6 : vector<8x128xf32> to vector<1x8x128xf32>
    %23 = vector.shape_cast %22 : vector<1x8x128xf32> to vector<1x8x128xf32>
    %24 = vector.broadcast %23 : vector<1x8x128xf32> to vector<3x8x128xf32>
    %25 = vector.shape_cast %0 : vector<8x1xf32> to vector<1x8x1xf32>
    %26 = vector.broadcast %25 : vector<1x8x1xf32> to vector<3x8x128xf32>
    %27 = vector.broadcast %3 : vector<3x1x128xf32> to vector<3x8x128xf32>
    %28 = arith.mulf %26, %27 : vector<3x8x128xf32>
    %29 = arith.addf %24, %28 : vector<3x8x128xf32>
    %cst = arith.constant 0.000000e+00 : f32
    %30 = vector.broadcast %cst : f32 to vector<2x128xf32>
    %cst_12 = arith.constant 0.000000e+00 : f32
    %31 = vector.broadcast %cst_12 : f32 to vector<2x128xf32>
    %32 = vector.extract_strided_slice %29 {offsets = [0, 0, 0], sizes = [1, 8, 128], strides = [1, 1, 1]} : vector<3x8x128xf32> to vector<1x8x128xf32>
    %33 = vector.shape_cast %32 : vector<1x8x128xf32> to vector<8x128xf32>
    %34 = vector.extract_strided_slice %30 {offsets = [0, 0], sizes = [1, 128], strides = [1, 1]} : vector<2x128xf32> to vector<1x128xf32>
    %35 = vector.broadcast %34 : vector<1x128xf32> to vector<8x128xf32>
    %36 = arith.mulf %9, %35 : vector<8x128xf32>
    %37 = arith.addf %33, %36 : vector<8x128xf32>
    %38 = vector.extract_strided_slice %30 {offsets = [1, 0], sizes = [1, 128], strides = [1, 1]} : vector<2x128xf32> to vector<1x128xf32>
    %39 = vector.broadcast %38 : vector<1x128xf32> to vector<8x128xf32>
    %40 = arith.mulf %12, %39 : vector<8x128xf32>
    %41 = arith.addf %37, %40 : vector<8x128xf32>
    %42 = arith.negf %41 : vector<8x128xf32>
    %43 = math.exp %42 : vector<8x128xf32>
    %cst_13 = arith.constant 1.000000e+00 : f32
    %44 = vector.broadcast %cst_13 : f32 to vector<8x128xf32>
    %45 = arith.addf %44, %43 : vector<8x128xf32>
    %46 = arith.divf %44, %45 : vector<8x128xf32>
    %47 = vector.extract_strided_slice %46 {offsets = [0, 0], sizes = [2, 128], strides = [1, 1]} : vector<8x128xf32> to vector<2x128xf32>
    %48 = vector.extract_strided_slice %46 {offsets = [2, 0], sizes = [2, 128], strides = [1, 1]} : vector<8x128xf32> to vector<2x128xf32>
    %49 = vector.extract_strided_slice %46 {offsets = [6, 0], sizes = [2, 128], strides = [1, 1]} : vector<8x128xf32> to vector<2x128xf32>
    %50 = vector.extract_strided_slice %41 {offsets = [4, 0], sizes = [2, 128], strides = [1, 1]} : vector<8x128xf32> to vector<2x128xf32>
    %51 = math.tanh %50 : vector<2x128xf32>
    %52 = arith.mulf %48, %31 : vector<2x128xf32>
    %53 = arith.mulf %47, %51 : vector<2x128xf32>
    %54 = arith.addf %52, %53 : vector<2x128xf32>
    %55 = math.tanh %54 : vector<2x128xf32>
    %56 = arith.mulf %49, %55 : vector<2x128xf32>
    %57 = vector.extract_strided_slice %29 {offsets = [1, 0, 0], sizes = [1, 8, 128], strides = [1, 1, 1]} : vector<3x8x128xf32> to vector<1x8x128xf32>
    %58 = vector.shape_cast %57 : vector<1x8x128xf32> to vector<8x128xf32>
    %59 = vector.extract_strided_slice %56 {offsets = [0, 0], sizes = [1, 128], strides = [1, 1]} : vector<2x128xf32> to vector<1x128xf32>
    %60 = vector.broadcast %59 : vector<1x128xf32> to vector<8x128xf32>
    %61 = arith.mulf %9, %60 : vector<8x128xf32>
    %62 = arith.addf %58, %61 : vector<8x128xf32>
    %63 = vector.extract_strided_slice %56 {offsets = [1, 0], sizes = [1, 128], strides = [1, 1]} : vector<2x128xf32> to vector<1x128xf32>
    %64 = vector.broadcast %63 : vector<1x128xf32> to vector<8x128xf32>
    %65 = arith.mulf %12, %64 : vector<8x128xf32>
    %66 = arith.addf %62, %65 : vector<8x128xf32>
    %67 = arith.negf %66 : vector<8x128xf32>
    %68 = math.exp %67 : vector<8x128xf32>
    %cst_14 = arith.constant 1.000000e+00 : f32
    %69 = vector.broadcast %cst_14 : f32 to vector<8x128xf32>
    %70 = arith.addf %69, %68 : vector<8x128xf32>
    %71 = arith.divf %69, %70 : vector<8x128xf32>
    %72 = vector.extract_strided_slice %71 {offsets = [0, 0], sizes = [2, 128], strides = [1, 1]} : vector<8x128xf32> to vector<2x128xf32>
    %73 = vector.extract_strided_slice %71 {offsets = [2, 0], sizes = [2, 128], strides = [1, 1]} : vector<8x128xf32> to vector<2x128xf32>
    %74 = vector.extract_strided_slice %71 {offsets = [6, 0], sizes = [2, 128], strides = [1, 1]} : vector<8x128xf32> to vector<2x128xf32>
    %75 = vector.extract_strided_slice %66 {offsets = [4, 0], sizes = [2, 128], strides = [1, 1]} : vector<8x128xf32> to vector<2x128xf32>
    %76 = math.tanh %75 : vector<2x128xf32>
    %77 = arith.mulf %73, %54 : vector<2x128xf32>
    %78 = arith.mulf %72, %76 : vector<2x128xf32>
    %79 = arith.addf %77, %78 : vector<2x128xf32>
    %80 = math.tanh %79 : vector<2x128xf32>
    %81 = arith.mulf %74, %80 : vector<2x128xf32>
    %82 = vector.extract_strided_slice %29 {offsets = [2, 0, 0], sizes = [1, 8, 128], strides = [1, 1, 1]} : vector<3x8x128xf32> to vector<1x8x128xf32>
    %83 = vector.shape_cast %82 : vector<1x8x128xf32> to vector<8x128xf32>
    %84 = vector.extract_strided_slice %81 {offsets = [0, 0], sizes = [1, 128], strides = [1, 1]} : vector<2x128xf32> to vector<1x128xf32>
    %85 = vector.broadcast %84 : vector<1x128xf32> to vector<8x128xf32>
    %86 = arith.mulf %9, %85 : vector<8x128xf32>
    %87 = arith.addf %83, %86 : vector<8x128xf32>
    %88 = vector.extract_strided_slice %81 {offsets = [1, 0], sizes = [1, 128], strides = [1, 1]} : vector<2x128xf32> to vector<1x128xf32>
    %89 = vector.broadcast %88 : vector<1x128xf32> to vector<8x128xf32>
    %90 = arith.mulf %12, %89 : vector<8x128xf32>
    %91 = arith.addf %87, %90 : vector<8x128xf32>
    %92 = arith.negf %91 : vector<8x128xf32>
    %93 = math.exp %92 : vector<8x128xf32>
    %cst_15 = arith.constant 1.000000e+00 : f32
    %94 = vector.broadcast %cst_15 : f32 to vector<8x128xf32>
    %95 = arith.addf %94, %93 : vector<8x128xf32>
    %96 = arith.divf %94, %95 : vector<8x128xf32>
    %97 = vector.extract_strided_slice %96 {offsets = [0, 0], sizes = [2, 128], strides = [1, 1]} : vector<8x128xf32> to vector<2x128xf32>
    %98 = vector.extract_strided_slice %96 {offsets = [2, 0], sizes = [2, 128], strides = [1, 1]} : vector<8x128xf32> to vector<2x128xf32>
    %99 = vector.extract_strided_slice %96 {offsets = [6, 0], sizes = [2, 128], strides = [1, 1]} : vector<8x128xf32> to vector<2x128xf32>
    %100 = vector.extract_strided_slice %91 {offsets = [4, 0], sizes = [2, 128], strides = [1, 1]} : vector<8x128xf32> to vector<2x128xf32>
    %101 = math.tanh %100 : vector<2x128xf32>
    %102 = arith.mulf %98, %79 : vector<2x128xf32>
    %103 = arith.mulf %97, %101 : vector<2x128xf32>
    %104 = arith.addf %102, %103 : vector<2x128xf32>
    %105 = math.tanh %104 : vector<2x128xf32>
    %106 = arith.mulf %99, %105 : vector<2x128xf32>
    %107 = vector.extract_strided_slice %106 {offsets = [0, 0], sizes = [1, 128], strides = [1, 1]} : vector<2x128xf32> to vector<1x128xf32>
    %108 = arith.mulf %15, %107 : vector<1x128xf32>
    %109 = arith.addf %21, %108 : vector<1x128xf32>
    %110 = vector.extract_strided_slice %106 {offsets = [1, 0], sizes = [1, 128], strides = [1, 1]} : vector<2x128xf32> to vector<1x128xf32>
    %111 = arith.mulf %18, %110 : vector<1x128xf32>
    %112 = arith.addf %109, %111 : vector<1x128xf32>
    %c0_16 = arith.constant 0 : index
    %c0_17 = arith.constant 0 : index
    %113 = vector.load %arg7[%c0_16, %c0_17] : memref<1x128xf32, #tpu.memory_space<vmem>>, vector<1x128xf32>
    tpu.vector_store %arg7[%c0_16, %c0_17], %112 {strides = array<i32>} : memref<1x128xf32, #tpu.memory_space<vmem>>, vector<1x128xf32>,
    return
  }
  func.func @transform_0(%arg0: i32) -> (i32, i32, i32) {
    %c0_i32 = arith.constant 0 : i32
    %c0_i32_0 = arith.constant 0 : i32
    %c0_i32_1 = arith.constant 0 : i32
    return %c0_i32, %c0_i32_0, %arg0 : i32, i32, i32
  }
  func.func @transform_1(%arg0: i32) -> (i32, i32) {
    %c0_i32 = arith.constant 0 : i32
    %c0_i32_0 = arith.constant 0 : i32
    %c0_i32_1 = arith.constant 0 : i32
    return %c0_i32, %c0_i32_0 : i32, i32
  }
  func.func @transform_2(%arg0: i32) -> (i32, i32) {
    %c0_i32 = arith.constant 0 : i32
    %c0_i32_0 = arith.constant 0 : i32
    %c0_i32_1 = arith.constant 0 : i32
    return %c0_i32, %c0_i32_0 : i32, i32
  }
  func.func @transform_3(%arg0: i32) -> (i32, i32) {
    %c0_i32 = arith.constant 0 : i32
    %c0_i32_0 = arith.constant 0 : i32
    %c0_i32_1 = arith.constant 0 : i32
    return %c0_i32, %c0_i32_0 : i32, i32
  }
  func.func @transform_4(%arg0: i32) -> (i32, i32) {
    %c0_i32 = arith.constant 0 : i32
    %c0_i32_0 = arith.constant 0 : i32
    %c0_i32_1 = arith.constant 0 : i32
    return %c0_i32, %c0_i32_0 : i32, i32
  }
  func.func @transform_5(%arg0: i32) -> (i32, i32) {
    %c0_i32 = arith.constant 0 : i32
    %c0_i32_0 = arith.constant 0 : i32
    %c0_i32_1 = arith.constant 0 : i32
    return %c0_i32, %c0_i32_0 : i32, i32
  }
  func.func @transform_6(%arg0: i32) -> (i32, i32) {
    %c0_i32 = arith.constant 0 : i32
    %c0_i32_0 = arith.constant 0 : i32
    return %c0_i32, %arg0 : i32, i32
  }
}

</mosaic_0001>

<bundles_post_ra>
// kernel: tpu_custom_call.1
= control target key start
LH: loop header
LB: loop body
LE: loop exit
PB: predicated region body
PF: predicated region fallthrough
CT: control target
= control target key end

     0   :  { %s350_s0 = inlined_call_operand.vmem [shape: f32[3,1,128], index: 0, kind: input, shape index: {}]   ;;  %s351_s1 = inlined_call_operand.vmem [shape: f32[8,1], index: 1, kind: input, shape index: {}]   ;;  %s352_s2 = inlined_call_operand.vmem [shape: f32[8,2], index: 2, kind: input, shape index: {}]   ;;  %s353_s3 = inlined_call_operand.vmem [shape: f32[8,1], index: 3, kind: input, shape index: {}]   ;;  %s354_s4 = inlined_call_operand.vmem [shape: f32[1,2], index: 4, kind: input, shape index: {}]   ;;  %s355_s5 = inlined_call_operand.<no memory space> [shape: f32[1,1], index: 5, kind: input, shape index: {}]   ;;  %s356_s6 = inlined_call_operand.hbm [shape: f32[1,128], index: 6, kind: output, shape index: {}]  }
   0x1   :  { %v11_v0 = vstv %s355_s5 }
   0x2   :  { %12 = vst [vmem:[#allocation2] sm:$0x1] %v11_v0 }
   0x3   :  { %v32_v1 = vld [vmem:[%s353_s3] sm:$0xff]  ;;  %v276_v3 = vmov 0  }
   0x4   :  { %v26_v2 = vld [vmem:[%s351_s1] sm:$0xff]  ;;  %226 = vset.pattern.permute.xlu1 %v276_v3  ;;  %225 = vset.pattern.permute.xlu0 %v276_v3 }
   0x5   :  { %71 = vperm.xlu1 %226, %v32_v1   ;;  %76 = vperm.xlu0 %225, %v26_v2  }
   0x6   :  { %13 = vsyncpa [#allocation4], 0  ;;  %v27_v4 = vld [vmem:[%s352_s2] sm:$0xff]  ;;  %v277_v5 = vmov 1   ;;  %v47_v32 = vlaneseq }
   0x7   :  { %v28_v6 = vld [vmem:[%s354_s4] sm:$0x1]  ;;  %v218_v9 = vld [vmem:[%s350_s0 + $0x2] ss:$0 sm:$0xff]  ;;  %v217_v35 = vld [vmem:[%s350_s0 + $0x1] ss:$0 sm:$0xff] }
   0x8   :  { %v216_v8 = vld [vmem:[%s350_s0] ss:$0 sm:$0xff]  ;;  %v48_v33 = vshrl.u32 %v47_v32, 7  ;;  %s278_s0 = smov [#allocation3]  }
   0x9   :  { %227 = vset.pattern.permute.xlu1 %v277_v5  ;;  %35 = vperm.xlu0 %225, %v27_v4   ;;  %v59_v7 = vld [vmem:[#allocation2] sm:$0x1]  ;;  %s208_s8 = sshll.u32 %s278_s0, 4  ;;  %s209_s8 = int_to_ptr.vmem [resolvable:$true] %s208_s8 }
   0xa   :  { %39 = vperm.xlu1 %227, %v27_v4   ;;  %v130_v36 = vsub.s32 6, %v48_v33  ;;  %v136_v37 = vsub.s32 7, %v48_v33  ;;  %s252_s9 = scalar_lea.vmem %s209_s8, 16  ;;  %s256_s10 = scalar_lea.vmem %s209_s8, 32 }
   0xb   :  { %p253_p0 = scmp.ne.s32.totalorder %s209_s8, %s252_s9  ;;  %p257_p1 = scmp.lt.s32.totalorder %s209_s8, %s209_s8 }
   0xc   :  { %p258_p2 = scmp.lt.s32.totalorder %s256_s10, %s252_s9 }
   0xd   :  { %44 = vperm.xlu0 %225, %v28_v6  }
   0xe   :  { %52 = vperm.xlu1 %227, %v28_v6   ;;  %p259_p3 = por %p258_p2, %p257_p1 }
  0x10   :  { %p260_p4 = pnand %p259_p3, %p253_p0 }
  0x11   :  { %62 = vperm.xlu0 %225, %v59_v7  }
  0x84   :  { %v77_v10 = vpop.permute.xlu0 %76  ;;  %v72_v11 = vpop.permute.xlu1 %71 }
  0x85   :  { %v97_v12 = vmul.f32 %v216_v8, %v77_v10  ;;  %v99_v13 = vmul.f32 %v218_v9, %v77_v10  ;;  %v98_v39 = vmul.f32 %v217_v35, %v77_v10 }
  0x87   :  { %v102_v14 = vadd.f32 %v99_v13, %v72_v11  ;;  %v100_v16 = vadd.f32 %v97_v12, %v72_v11  ;;  %v101_v43 = vadd.f32 %v98_v39, %v72_v11 }
  0x88   :  { %v36_v15 = vpop.permute.xlu0 %35 }
  0x89   :  { %v103_v17 = vmul.f32 0.0, %v36_v15  ;;  %v40_v18 = vpop.permute.xlu1 %39 }
  0x8a   :  { %v105_v19 = vmul.f32 0.0, %v40_v18 }
  0x8b   :  { %v104_v20 = vadd.f32 %v103_v17, %v100_v16  ;;  %v49_v16 = vsub.s32 0, %v48_v33 }
  0x8c   :  { %v45_v13 = vpop.permute.xlu0 %44 }
  0x8d   :  { %v106_v21 = vadd.f32 %v105_v19, %v104_v20  ;;  %v50_v20 = vrot.slane %v45_v13, %v49_v16 }
  0x8f   :  { %v219_v22 = vmul.f32 -1.442695, %v106_v21 }
  0x91   :  { %228 = vpow2.f32 %v219_v22 }
  0x92   :  { %230 = vtanh.f32 %v106_v21 }
  0x9b   :  { %v229_v23 = vpop.eup %228 }
  0x9c   :  { %v110_v24 = vadd.f32 1.0, %v229_v23  ;;  %v231_v25 = vpop.eup %230 }
  0x9d   :  { %v116_v26 = vrot.slane %v231_v25, 4 }
  0x9e   :  { %232 = vrcp.f32 %v110_v24 }
  0xa8   :  { %v233_v27 = vpop.eup %232 }
  0xa9   :  { %v118_v28 = vmul.f32 %v233_v27, %v116_v26  ;;  %v114_v29 = vmul.f32 0.0, %v233_v27 }
  0xab   :  { %v120_v30 = vrot.slane %v118_v28, 6 }
  0xad   :  { %v122_v31 = vadd.f32 %v120_v30, %v114_v29 }
  0xaf   :  { %234 = vtanh.f32 %v122_v31 }
  0xb9   :  { %v235_v34 = vpop.eup %234 }
  0xba   :  { %v125_v38 = vrot.slane %v235_v34, 4 }
  0xbc   :  { %v127_v40 = vmul.f32 %v233_v27, %v125_v38 }
  0xbe   :  { %v131_v41 = vrot.slane %v127_v40, %v130_v36  ;;  %v137_v42 = vrot.slane %v127_v40, %v136_v37 }
  0xc0   :  { %v132_v44 = vmul.f32 %v131_v41, %v36_v15  ;;  %v138_v46 = vmul.f32 %v137_v42, %v40_v18 }
  0xc2   :  { %v133_v45 = vadd.f32 %v132_v44, %v101_v43 }
  0xc4   :  { %v139_v47 = vadd.f32 %v138_v46, %v133_v45 }
  0xc6   :  { %v220_v48 = vmul.f32 -1.442695, %v139_v47 }
  0xc8   :  { %236 = vpow2.f32 %v220_v48 }
  0xc9   :  { %238 = vtanh.f32 %v139_v47 }
  0xd2   :  { %v237_v49 = vpop.eup %236 }
  0xd3   :  { %v143_v50 = vadd.f32 1.0, %v237_v49  ;;  %v239_v51 = vpop.eup %238 }
  0xd4   :  { %v149_v52 = vrot.slane %v239_v51, 4 }
  0xd5   :  { %240 = vrcp.f32 %v143_v50 }
  0xdf   :  { %v241_v53 = vpop.eup %240 }
  0xe0   :  { %v151_v54 = vmul.f32 %v241_v53, %v149_v52  ;;  %v147_v55 = vmul.f32 %v241_v53, %v122_v31 }
  0xe2   :  { %v153_v56 = vrot.slane %v151_v54, 6 }
  0xe4   :  { %v155_v57 = vadd.f32 %v153_v56, %v147_v55 }
  0xe6   :  { %242 = vtanh.f32 %v155_v57 }
  0xf0   :  { %v243_v58 = vpop.eup %242 }
  0xf1   :  { %v158_v59 = vrot.slane %v243_v58, 4 }
  0xf3   :  { %v160_v60 = vmul.f32 %v241_v53, %v158_v59 }
  0xf5   :  { %v164_v61 = vrot.slane %v160_v60, %v130_v36  ;;  %v170_v62 = vrot.slane %v160_v60, %v136_v37 }
  0xf7   :  { %v165_v63 = vmul.f32 %v164_v61, %v36_v15  ;;  %v171_v1 = vmul.f32 %v170_v62, %v40_v18  ;;  %v63_v18 = vpop.permute.xlu0 %62 }
  0xf8   :  { %v68_v24 = vrot.slane %v63_v18, %v49_v16 }
  0xf9   :  { %v166_v0 = vadd.f32 %v165_v63, %v102_v14  ;;  %v53_v14 = vpop.permute.xlu1 %52 }
  0xfa   :  { %v58_v21 = vrot.slane %v53_v14, %v49_v16 }
  0xfb   :  { %v172_v2 = vadd.f32 %v171_v1, %v166_v0 }
  0xfd   :  { %v221_v3 = vmul.f32 -1.442695, %v172_v2 }
  0xff   :  { %244 = vpow2.f32 %v221_v3 }
 0x100   :  { %246 = vtanh.f32 %v172_v2 }
 0x109   :  { %v245_v4 = vpop.eup %244 }
 0x10a   :  { %v176_v5 = vadd.f32 1.0, %v245_v4  ;;  %v247_v6 = vpop.eup %246 }
 0x10b   :  { %v182_v7 = vrot.slane %v247_v6, 4 }
 0x10c   :  { %248 = vrcp.f32 %v176_v5 }
 0x116   :  { %v249_v8 = vpop.eup %248 }
 0x117   :  { %v184_v9 = vmul.f32 %v249_v8, %v182_v7  ;;  %v180_v10 = vmul.f32 %v249_v8, %v155_v57 }
 0x119   :  { %v186_v11 = vrot.slane %v184_v9, 6 }
 0x11b   :  { %v188_v12 = vadd.f32 %v186_v11, %v180_v10 }
 0x11d   :  { %250 = vtanh.f32 %v188_v12 }
 0x127   :  { %v251_v15 = vpop.eup %250 }
 0x128   :  { %v191_v17 = vrot.slane %v251_v15, 4 }
 0x12a   :  { %v193_v19 = vmul.f32 %v249_v8, %v191_v17 }
 0x12c   :  { %v194_v22 = vmul.f32 %v193_v19, %v50_v20  ;;  %v196_v23 = vmul.f32 %v193_v19, %v58_v21 }
 0x12e   :  { %v198_v25 = vrot.slane %v196_v23, 1  ;;  %v195_v26 = vadd.f32 %v194_v22, %v68_v24 }
 0x130   :  { %v200_v27 = vadd.f32 %v198_v25, %v195_v26 }
 0x132   :  { %201 = vst [vmem:[#allocation3 - $0x6] sm:$0x40] %v200_v27 }
 0x133   :  { %263 = shalt.err (!%p260_p4)
}
 0x134   :  { %s264_s13 = scalar_lea.hbm %s356_s6, 16 }
 0x135   :  { %p265_p5 = scmp.ne.s32.totalorder %s356_s6, %s264_s13  ;;  %p268_p6 = scmp.lt.u32.totalorder %s264_s13, %s356_s6 }
 0x137   :  { %p270_p7 = pnand %p268_p6, %p265_p5 }
 0x139   :  { %273 = shalt.err (!%p270_p7)
}
 0x13a   :  { %211 = dma.vmem_to_hbm [thread:$0]  %s209_s8, 16, %s356_s6, [#allocation4]  }
 0x13b   :  { %274 = dma.done.wait [#allocation4], 16  }
 0x13c   :  { %275 = vsyncadd [#allocation4], 4294967280 }
 0x13d   :  { %215 = vsyncpa [#allocation4], 1 }

</bundles_post_ra>
